<compile_context>
chip_gen: v6e
topology: v6e:2x2x1
jax: 0.10.0
libtpu: 0.0.40
codegen_flags: <defaults>
</compile_context>

<pallas_src>
import jax
import jax.numpy as jnp
from jax import lax
from jax.experimental import pallas as pl
from jax.experimental.pallas import tpu as pltpu

EPS = 1e-07


def batchnorm_kernel(x_ref, gamma_ref, beta_ref, o_ref):
    # x_ref block: (TA, B, C) -- TA whole samples per grid step.
    x = x_ref[...]                                               # native dtype
    _, B, C = x.shape

    # f32 view for the stats reductions only (fused into the reduces; for f32 inputs
    # this is a no-op, for bf16 the convert feeds the reduce without a stored copy).
    xf = x.astype(jnp.float32)

    # Single fused sweep over B: per-channel sum and sum of squares.
    colsum = jnp.sum(xf, axis=1, keepdims=True)                  # (TA, 1, C)
    sqsum = jnp.sum(xf * xf, axis=1, keepdims=True)              # (TA, 1, C)

    # Per-sample global mean over (B, C) from the tiny colsum row
    # (== mean(dim=1).mean(dim=1), equal-size means).
    mu = jnp.sum(colsum, axis=2, keepdims=True) * (1.0 / (B * C))  # (TA, 1, 1)

    # Shift-invariant single-pass unbiased variance over B, derived without a
    # centered full-block temporary: s1/s2 are the centered sums.
    s1 = colsum - B * mu                                         # (TA, 1, C)
    s2 = sqsum - 2.0 * mu * colsum + B * (mu * mu)               # (TA, 1, C)
    var1 = (s2 - s1 * s1 * (1.0 / B)) * (1.0 / (B - 1))          # (TA, 1, C)

    # Unbiased variance of var1 over C (tiny (TA,1,C) tensor, two-pass form).
    m1 = jnp.mean(var1, axis=2, keepdims=True)                   # (TA, 1, 1)
    d1 = var1 - m1
    var2 = jnp.sum(d1 * d1, axis=2, keepdims=True) * (1.0 / (C - 1))  # (TA, 1, 1)

    # Folded affine: no per-element divide, single mul+add per element.
    inv = lax.rsqrt(var2 + EPS)                                  # (TA, 1, 1)
    scale = gamma_ref[...] * inv                                 # (TA, B, 1) f32
    shift = beta_ref[...] - mu * scale                           # (TA, B, 1) f32

    if jnp.issubdtype(x.dtype, jnp.floating) and jnp.dtype(x.dtype).itemsize < 4:
        # bf16/fp16 inputs: native-dtype affine (v6e/v7x VALU does bf16 natively),
        # stats stay f32. Halves ld/st traffic vs. a full-block f32 upcast.
        o_ref[...] = (x * scale.astype(x.dtype) + shift.astype(x.dtype)).astype(o_ref.dtype)
    else:
        o_ref[...] = (xf * scale + shift).astype(o_ref.dtype)


def _vmem_capacity_bytes():
    try:
        info = pltpu.get_tpu_info()
        cap = getattr(info, "vmem_capacity_bytes", None)
        if cap:
            return int(cap)
    except Exception:
        pass
    return 64 * 1024 * 1024  # conservative fallback (v7x per-TC)


def _auto_sizes(A, B, C, dtype):
    """Generation-aware block-rows (ta) and vmem limit."""
    cap = _vmem_capacity_bytes()
    if cap >= 96 * 1024 * 1024:            # v5e / v6e: 128 MiB VMEM
        slab_target = 8 * 1024 * 1024      # ~8 MiB input slab per step
        vmem_limit = 96 * 1024 * 1024
    else:                                  # v7x: 64 MiB VMEM per TC
        slab_target = 4 * 1024 * 1024      # tighter slab, leave headroom
        vmem_limit = 40 * 1024 * 1024

    itemsize = jnp.dtype(dtype).itemsize
    per_sample_in = B * C * itemsize
    # Real residency per sample of block: double-buffered input + double-buffered
    # output + ~1 f32 sample of headroom for fused stat temporaries / scratch.
    per_sample_resident = 4 * per_sample_in + 4 * B * C

    ta_resident = max(1, (vmem_limit // 2) // max(per_sample_resident, 1))
    ta_slab = max(1, slab_target // max(per_sample_in, 1))
    ta = min(ta_resident, ta_slab, A)
    # Keep the "parallel" grid at >= 2 steps (ideally >= 8): v7x has 2 TensorCores
    # and a length-1 grid would idle one of them and kill compute/DMA overlap.
    ta = min(ta, max(1, pl.cdiv(A, 8)))
    return max(1, ta), vmem_limit


def batch_norm_pallas(x, gamma, beta, *, ta=None, vmem_limit_bytes=None):
    A, B, C = x.shape
    assert B > 1 and C > 1, "unbiased variances need B > 1 and C > 1 (ddof=1)"

    g = gamma.reshape(1, B, 1).astype(jnp.float32)
    b = beta.reshape(1, B, 1).astype(jnp.float32)

    auto_ta, auto_limit = _auto_sizes(A, B, C, x.dtype)
    if ta is None:
        ta = auto_ta
    if vmem_limit_bytes is None:
        vmem_limit_bytes = auto_limit

    grid = (pl.cdiv(A, ta),)
    return pl.pallas_call(
        batchnorm_kernel,
        out_shape=jax.ShapeDtypeStruct((A, B, C), x.dtype),
        grid=grid,
        in_specs=[
            pl.BlockSpec((ta, B, C), lambda g_: (g_, 0, 0)),   # TA samples / step
            pl.BlockSpec((1, B, 1), lambda g_: (0, 0, 0)),     # gamma (resident)
            pl.BlockSpec((1, B, 1), lambda g_: (0, 0, 0)),     # beta  (resident)
        ],
        out_specs=pl.BlockSpec((ta, B, C), lambda g_: (g_, 0, 0)),
        compiler_params=pltpu.CompilerParams(
            dimension_semantics=("parallel",),
            vmem_limit_bytes=vmem_limit_bytes,
        ),
    )(x, g, b)


def batch_norm_ref(x, gamma, beta):
    # Pure-JAX reference mirroring the PyTorch forward exactly.
    mu = x.mean(axis=1).mean(axis=1)                         # (A,)
    var1 = jnp.var(x, axis=1, ddof=1)                        # (A, C)
    var2 = jnp.var(var1, axis=1, ddof=1)                     # (A,)
    bottom = jnp.sqrt(var2 + EPS)                            # (A,)
    top = x - mu[:, None, None]
    return (top / bottom[:, None, None]) * gamma[None, :, None] + beta[None, :, None]


if __name__ == "__main__":
    # (batch, channels=dim, time). C = 128 keeps the last dim lane-dense
    # (128-lane axis) while staying small.
    A, B, C = 2, 4, 128
    key = jax.random.PRNGKey(0)
    x = jax.random.normal(key, (A, B, C), dtype=jnp.float32)

    # Deterministic parameter init matching BatchNorm.__init__(dim=B)
    gamma = jnp.ones((B,), dtype=jnp.float32)
    beta = jnp.zeros((B,), dtype=jnp.float32)

    out = jax.block_until_ready(batch_norm_pallas(x, gamma, beta))
    ref = batch_norm_ref(x, gamma, beta)
    assert out.shape == (A, B, C)
    assert jnp.allclose(out, ref, atol=1e-5, rtol=1e-5)
    print("KERNEL_OK")
</pallas_src>

<mosaic_0001>
module attributes {stable_mosaic.version = 11 : i64} {
  func.func @batchnorm_kernel(%arg0: i32, %arg1: memref<1x4x128xf32, #tpu.memory_space<vmem>>, %arg2: memref<1x4x1xf32, #tpu.memory_space<vmem>>, %arg3: memref<1x4x1xf32, #tpu.memory_space<vmem>>, %arg4: memref<1x4x128xf32, #tpu.memory_space<vmem>>) attributes {dimension_semantics = [#tpu.dimension_semantics<parallel>], iteration_bounds = array<i64: 2>, scalar_prefetch = 0 : i64, scratch_operands = 0 : i64, tpu.core_type = #tpu.core_type<tc>, window_params = [{transform_indices = @transform_0, window_bounds = array<i64: 1, 4, 128>}, {pipeline_mode = #tpu.pipeline_mode<synchronous>, transform_indices = @transform_1, window_bounds = array<i64: 1, 4, 1>}, {pipeline_mode = #tpu.pipeline_mode<synchronous>, transform_indices = @transform_2, window_bounds = array<i64: 1, 4, 1>}, {transform_indices = @transform_3, window_bounds = array<i64: 1, 4, 128>}]} {
    %c0 = arith.constant 0 : index
    %c0_0 = arith.constant 0 : index
    %c0_1 = arith.constant 0 : index
    %0 = vector.load %arg1[%c0, %c0_0, %c0_1] : memref<1x4x128xf32, #tpu.memory_space<vmem>>, vector<1x4x128xf32>
    %cst = arith.constant dense<0.000000e+00> : vector<1x128xf32>
    %1 = vector.multi_reduction <add>, %0, %cst [1] : vector<1x4x128xf32> to vector<1x128xf32>
    %2 = vector.shape_cast %1 : vector<1x128xf32> to vector<1x1x128xf32>
    %3 = arith.mulf %0, %0 : vector<1x4x128xf32>
    %cst_2 = arith.constant dense<0.000000e+00> : vector<1x128xf32>
    %4 = vector.multi_reduction <add>, %3, %cst_2 [1] : vector<1x4x128xf32> to vector<1x128xf32>
    %5 = vector.shape_cast %4 : vector<1x128xf32> to vector<1x1x128xf32>
    %cst_3 = arith.constant dense<0.000000e+00> : vector<1x1xf32>
    %6 = vector.multi_reduction <add>, %2, %cst_3 [2] : vector<1x1x128xf32> to vector<1x1xf32>
    %7 = vector.shape_cast %6 : vector<1x1xf32> to vector<1x1x1xf32>
    %cst_4 = arith.constant 0.001953125 : f32
    %8 = vector.broadcast %cst_4 : f32 to vector<1x1x1xf32>
    %9 = arith.mulf %7, %8 : vector<1x1x1xf32>
    %cst_5 = arith.constant 4.000000e+00 : f32
    %10 = vector.broadcast %cst_5 : f32 to vector<1x1x1xf32>
    %11 = arith.mulf %10, %9 : vector<1x1x1xf32>
    %12 = vector.broadcast %11 : vector<1x1x1xf32> to vector<1x1x128xf32>
    %13 = arith.subf %2, %12 : vector<1x1x128xf32>
    %cst_6 = arith.constant 2.000000e+00 : f32
    %14 = vector.broadcast %cst_6 : f32 to vector<1x1x1xf32>
    %15 = arith.mulf %14, %9 : vector<1x1x1xf32>
    %16 = vector.broadcast %15 : vector<1x1x1xf32> to vector<1x1x128xf32>
    %17 = arith.mulf %16, %2 : vector<1x1x128xf32>
    %18 = arith.subf %5, %17 : vector<1x1x128xf32>
    %19 = arith.mulf %9, %9 : vector<1x1x1xf32>
    %cst_7 = arith.constant 4.000000e+00 : f32
    %20 = vector.broadcast %cst_7 : f32 to vector<1x1x1xf32>
    %21 = arith.mulf %20, %19 : vector<1x1x1xf32>
    %22 = vector.broadcast %21 : vector<1x1x1xf32> to vector<1x1x128xf32>
    %23 = arith.addf %18, %22 : vector<1x1x128xf32>
    %24 = arith.mulf %13, %13 : vector<1x1x128xf32>
    %cst_8 = arith.constant 2.500000e-01 : f32
    %25 = vector.broadcast %cst_8 : f32 to vector<1x1x128xf32>
    %26 = arith.mulf %24, %25 : vector<1x1x128xf32>
    %27 = arith.subf %23, %26 : vector<1x1x128xf32>
    %cst_9 = arith.constant 0.333333343 : f32
    %28 = vector.broadcast %cst_9 : f32 to vector<1x1x128xf32>
    %29 = arith.mulf %27, %28 : vector<1x1x128xf32>
    %cst_10 = arith.constant dense<0.000000e+00> : vector<1x1xf32>
    %30 = vector.multi_reduction <add>, %29, %cst_10 [2] : vector<1x1x128xf32> to vector<1x1xf32>
    %31 = vector.shape_cast %30 : vector<1x1xf32> to vector<1x1x1xf32>
    %cst_11 = arith.constant 1.280000e+02 : f32
    %32 = vector.broadcast %cst_11 : f32 to vector<1x1x1xf32>
    %33 = arith.divf %31, %32 : vector<1x1x1xf32>
    %34 = vector.broadcast %33 : vector<1x1x1xf32> to vector<1x1x128xf32>
    %35 = arith.subf %29, %34 : vector<1x1x128xf32>
    %36 = arith.mulf %35, %35 : vector<1x1x128xf32>
    %cst_12 = arith.constant dense<0.000000e+00> : vector<1x1xf32>
    %37 = vector.multi_reduction <add>, %36, %cst_12 [2] : vector<1x1x128xf32> to vector<1x1xf32>
    %38 = vector.shape_cast %37 : vector<1x1xf32> to vector<1x1x1xf32>
    %cst_13 = arith.constant 0.00787401571 : f32
    %39 = vector.broadcast %cst_13 : f32 to vector<1x1x1xf32>
    %40 = arith.mulf %38, %39 : vector<1x1x1xf32>
    %cst_14 = arith.constant 1.000000e-07 : f32
    %41 = vector.broadcast %cst_14 : f32 to vector<1x1x1xf32>
    %42 = arith.addf %40, %41 : vector<1x1x1xf32>
    %43 = math.rsqrt %42 : vector<1x1x1xf32>
    %c0_15 = arith.constant 0 : index
    %c0_16 = arith.constant 0 : index
    %c0_17 = arith.constant 0 : index
    %44 = vector.load %arg2[%c0_15, %c0_16, %c0_17] : memref<1x4x1xf32, #tpu.memory_space<vmem>>, vector<1x4x1xf32>
    %45 = vector.broadcast %43 : vector<1x1x1xf32> to vector<1x4x1xf32>
    %46 = arith.mulf %44, %45 : vector<1x4x1xf32>
    %c0_18 = arith.constant 0 : index
    %c0_19 = arith.constant 0 : index
    %c0_20 = arith.constant 0 : index
    %47 = vector.load %arg3[%c0_18, %c0_19, %c0_20] : memref<1x4x1xf32, #tpu.memory_space<vmem>>, vector<1x4x1xf32>
    %48 = vector.broadcast %9 : vector<1x1x1xf32> to vector<1x4x1xf32>
    %49 = arith.mulf %48, %46 : vector<1x4x1xf32>
    %50 = arith.subf %47, %49 : vector<1x4x1xf32>
    %51 = vector.broadcast %46 : vector<1x4x1xf32> to vector<1x4x128xf32>
    %52 = arith.mulf %0, %51 : vector<1x4x128xf32>
    %53 = vector.broadcast %50 : vector<1x4x1xf32> to vector<1x4x128xf32>
    %54 = arith.addf %52, %53 : vector<1x4x128xf32>
    %c0_21 = arith.constant 0 : index
    %c0_22 = arith.constant 0 : index
    %c0_23 = arith.constant 0 : index
    %55 = vector.load %arg4[%c0_21, %c0_22, %c0_23] : memref<1x4x128xf32, #tpu.memory_space<vmem>>, vector<1x4x128xf32>
    tpu.vector_store %arg4[%c0_21, %c0_22, %c0_23], %54 {strides = array<i32>} : memref<1x4x128xf32, #tpu.memory_space<vmem>>, vector<1x4x128xf32>,
    return
  }
  func.func @transform_0(%arg0: i32) -> (i32, i32, i32) {
    %c0_i32 = arith.constant 0 : i32
    %c0_i32_0 = arith.constant 0 : i32
    %c0_i32_1 = arith.constant 0 : i32
    return %arg0, %c0_i32, %c0_i32_0 : i32, i32, i32
  }
  func.func @transform_1(%arg0: i32) -> (i32, i32, i32) {
    %c0_i32 = arith.constant 0 : i32
    %c0_i32_0 = arith.constant 0 : i32
    %c0_i32_1 = arith.constant 0 : i32
    %c0_i32_2 = arith.constant 0 : i32
    return %c0_i32, %c0_i32_0, %c0_i32_1 : i32, i32, i32
  }
  func.func @transform_2(%arg0: i32) -> (i32, i32, i32) {
    %c0_i32 = arith.constant 0 : i32
    %c0_i32_0 = arith.constant 0 : i32
    %c0_i32_1 = arith.constant 0 : i32
    %c0_i32_2 = arith.constant 0 : i32
    return %c0_i32, %c0_i32_0, %c0_i32_1 : i32, i32, i32
  }
  func.func @transform_3(%arg0: i32) -> (i32, i32, i32) {
    %c0_i32 = arith.constant 0 : i32
    %c0_i32_0 = arith.constant 0 : i32
    %c0_i32_1 = arith.constant 0 : i32
    return %arg0, %c0_i32, %c0_i32_0 : i32, i32, i32
  }
}

</mosaic_0001>

<bundles_post_ra>
// kernel: tpu_custom_call.1
= control target key start
LH: loop header
LB: loop body
LE: loop exit
PB: predicated region body
PF: predicated region fallthrough
CT: control target
= control target key end

     0   :  { %8 = vsyncpa [#allocation3], 0  ;;  %s531_s0 = inlined_call_operand.vmem [shape: f32[2,4,128], index: 0, kind: input, shape index: {}]   ;;  %s532_s1 = inlined_call_operand.vmem [shape: f32[1,4,1], index: 1, kind: input, shape index: {}]   ;;  %s533_s2 = inlined_call_operand.vmem [shape: f32[1,4,1], index: 2, kind: input, shape index: {}]   ;;  %s534_s3 = inlined_call_operand.hbm [shape: f32[2,4,128], index: 3, kind: output, shape index: {}]  }
   0x1   :  { %10 = vsyncpa [#allocation3 + $0x1], 0  ;;  %s438_s12 = smov 0   ;;  %s440_s13 = smov 0  }
   0x2   :  { %s442_s14 = smov 0   ;;  %s444_s15 = smov 0  }
   0x3 LB: > { %s459_s16 = sadd.s32 4294967295, %s414_s15   ;;  %s300_s17 = sadd.s32 4294967294, %s414_s15   ;;  %s414_s15 = sphi %s444_s15, %s540_s15   ;;  %s410_s14 = sphi %s442_s14, %s539_s14   ;;  %s406_s13 = sphi %s440_s13, %s538_s13   ;;  %s402_s12 = sphi %s438_s12, %s537_s12  }
   0x4   : > { %s463_s18 = sadd.s32 1, %s414_s15   ;;  %s91_s19 = sadd.s32 1, %s410_s14 }
   0x5   : > { %s88_s20 = ssub.s32 %s414_s15, %s463_s18  ;;  %p101_p0 = scmp.ne.s32.totalorder %s410_s14, %s406_s13 }
   0x6   : > { %p89_p1 = scmp.eq.s32.totalorder %s88_s20, 0  ;;  %p102_p2 = scmp.eq.s32.totalorder %s459_s16, 1 }
   0x7   : > { %p107_p3 = scmp.ne.s32.totalorder %s406_s13, %s402_s12  ;;  %p108_p4 = scmp.eq.s32.totalorder %s300_s17, 1 }
   0x8   : > { %s474_s21 = scalar_select %p89_p1, %s410_s14, %s91_s19  }
   0x9   : > { %p476_p5 = por %p102_p2, %p101_p0  ;;  %p480_p6 = por %p108_p4, %p107_p3 }
   0xa   : > { %p303_p7 = scmp.ge.s32.totalorder %s414_s15, 1  ;;  %p139_p8 = scmp.lt.s32.totalorder %s414_s15, 3 }
   0xc   : > { %p140_p9 = pnand %p303_p7, %p139_p8 }
   0xd   : > { %p162_p10 = scmp.lt.s32.totalorder (!%p140_p9), %s459_s16, 1  ;;  %s159_s6 = sand.u32 (!%p140_p9), 1, %s406_s13  }
   0xe   : > { %143 = sbr.rel (%p140_p9) target bundleno = 634 (0x27a), region = 32  ;;  %s304_s7 = sshll.u32 (!%p140_p9), %s159_s6, 2 }
   0xf   : > { %s307_s8 = sshll.u32 (!%p140_p9), %s459_s16, 6  ;;  %s161_s9 = scalar_lea.vmem (!%p140_p9), [#allocation2], %s304_s7 }
  0x10   : > { %s241_s10 = sshll.u32 (!%p140_p9), %s161_s9, 4  ;;  %s239_s19 = scalar_lea.hbm (!%p140_p9), %s534_s3, %s307_s8  ;;  %s242_s10 = int_to_ptr.vmem [resolvable:$true] %s241_s10 }
  0x11   : > { %s228_s20 = scalar_lea.sflag (!%p140_p9), [#allocation3], %s159_s6 }
  0x13   : > { %s163_s24 = scalar_select %p162_p10, %s459_s16, 1  ;;  %vm167_vm0 = vcmask 1043456   ;;  %v416_v34 = vmov 0   ;;  %v209_v38 = vld [vmem:[%s532_s1] sm:$0xf] }
  0x14   : > { %350 = vset.pattern.permute.xlu1 %v416_v34  ;;  %351 = vset.pattern.permute.xlu0 %v416_v34  ;;  %v211_v41 = vld [vmem:[%s533_s2] sm:$0xf] }
  0x15   : > { %s305_s25 = sshll.u32 %s163_s24, 2  ;;  %s354_s24 = scalar_lea.vmem %s242_s10, 64 }
  0x16   : > { %s165_s28 = scalar_lea.vmem %s531_s0, %s305_s25  ;;  %p355_p11 = scmp.ne.s32.totalorder %s242_s10, %s354_s24 }
  0x17   : > { %v166_v0 = vld [vmem:[%s165_s28] sm:$0xf]  ;;  %s417_s25 = smov [#allocation2]  }
  0x18   : > { %v168_v1 = vsel %vm167_vm0, %v166_v0, 0.0  ;;  %v175_v8 = vmul.f32 %v166_v0, %v166_v0  ;;  %p356_p12 = pnand %p355_p11, %p476_p5  ;;  %s358_s26 = sshll.u32 %s417_s25, 4  ;;  %s359_s26 = int_to_ptr.vmem [resolvable:$false] %s358_s26 }
  0x19   : > { %v169_v2 = vrot.slane %v168_v1, 4  ;;  %s360_s16 = scalar_lea.vmem %s359_s26, 128  ;;  %p361_p0 = scmp.lt.s32.totalorder %s242_s10, %s359_s26 }
  0x1a   : > { %v176_v9 = vsel %vm167_vm0, %v175_v8, 0.0  ;;  %p357_p13 = pneg %p356_p12  ;;  %p362_p1 = scmp.lt.s32.totalorder %s360_s16, %s354_s24 }
  0x1b   : > { %v170_v3 = vadd.f32 %v169_v2, %v168_v1  ;;  %v177_v10 = vrot.slane %v176_v9, 4 }
  0x1c   : > { %p363_p2 = por %p362_p1, %p361_p0 }
  0x1d   : > { %v171_v4 = vrot.slane %v170_v3, 2  ;;  %v178_v11 = vadd.f32 %v177_v10, %v176_v9 }
  0x1e   : > { %p364_p3 = pnand %p363_p2, %p357_p13 }
  0x1f   : > { %v172_v5 = vadd.f32 %v171_v4, %v170_v3  ;;  %v179_v12 = vrot.slane %v178_v11, 2 }
  0x21   : > { %v173_v6 = vrot.slane %v172_v5, 1  ;;  %v180_v13 = vadd.f32 %v179_v12, %v178_v11 }
  0x23   : > { %v174_v7 = vadd.f32 %v173_v6, %v172_v5  ;;  %v181_v14 = vrot.slane %v180_v13, 1 }
  0x25   : > { %183 = vadd.xlane.f32.xlu0 %v174_v7  ;;  %v182_v18 = vadd.f32 %v181_v14, %v180_v13 }
  0xae   : > { %v184_v15 = vpop.xlane.xlu0 %183 }
  0xaf   : > { %v185_v16 = vmul.f32 0.001953125, %v184_v15 }
  0xb1   : > { %v188_v17 = vmul.f32 2.0, %v185_v16  ;;  %v186_v19 = vmul.f32 4.0, %v185_v16  ;;  %v191_v20 = vmul.f32 %v185_v16, %v185_v16 }
  0xb3   : > { %v187_v21 = vsub.f32 %v174_v7, %v186_v19  ;;  %v189_v22 = vmul.f32 %v188_v17, %v174_v7  ;;  %v192_v24 = vmul.f32 4.0, %v191_v20 }
  0xb5   : > { %v190_v23 = vsub.f32 %v182_v18, %v189_v22  ;;  %v194_v25 = vmul.f32 %v187_v21, %v187_v21 }
  0xb7   : > { %v193_v26 = vadd.f32 %v192_v24, %v190_v23  ;;  %v195_v27 = vmul.f32 0.25, %v194_v25 }
  0xb9   : > { %v196_v28 = vsub.f32 %v193_v26, %v195_v27 }
  0xbb   : > { %v197_v29 = vmul.f32 0.33333334, %v196_v28 }
  0xbd   : > { %198 = vadd.xlane.f32.xlu0 %v197_v29 }
 0x146   : > { %v199_v30 = vpop.xlane.xlu0 %198 }
 0x147   : > { %v201_v31 = vmul.f32 0.0078125, %v199_v30 }
 0x149   : > { %v202_v32 = vsub.f32 %v197_v29, %v201_v31 }
 0x14b   : > { %v203_v33 = vmul.f32 %v202_v32, %v202_v32 }
 0x14d   : > { %204 = vadd.xlane.f32.xlu1 %v203_v33 }
 0x1d6   : > { %v205_v35 = vpop.xlane.xlu1 %204 }
 0x1d7   : > { %v206_v36 = vmul.f32 0.007874016, %v205_v35 }
 0x1d9   : > { %v207_v37 = vadd.f32 1e-07, %v206_v36 }
 0x1db   : > { %352 = vrsqrt.f32 %v207_v37 }
 0x1e8   : > { %v353_v39 = vpop.eup %352 }
 0x1e9   : > { %v210_v40 = vmul.f32 %v353_v39, %v209_v38 }
 0x1eb   : > { %216 = vperm.xlu1 %350, %v210_v40   ;;  %v212_v42 = vmul.f32 %v210_v40, %v185_v16 }
 0x1ed   : > { %v213_v43 = vsub.f32 %v211_v41, %v212_v42 }
 0x1ef   : > { %222 = vperm.xlu0 %351, %v213_v43  }
 0x266   : > { %v217_v44 = vpop.permute.xlu1 %216 }
 0x267   : > { %v219_v45 = vmul.f32 %v217_v44, %v166_v0 }
 0x26a   : > { %v223_v46 = vpop.permute.xlu0 %222 }
 0x26b   : > { %v225_v47 = vadd.f32 %v223_v46, %v219_v45 }
 0x26d   : > { %226 = vst [vmem:[%s161_s9] sm:$0xf] %v225_v47 }
 0x26e   : > { %367 = shalt.err (!%p364_p3)
}
 0x26f   : > { %s368_s27 = scalar_lea.hbm %s239_s19, 64  ;;  %s372_s30 = scalar_lea.hbm %s534_s3, 128 }
 0x270   : > { %p369_p4 = scmp.ne.s32.totalorder %s239_s19, %s368_s27  ;;  %p373_p9 = scmp.lt.s32.totalorder %s239_s19, %s534_s3 }
 0x271   : > { %p374_p10 = scmp.lt.s32.totalorder %s372_s30, %s368_s27 }
 0x272   : > { %p370_p7 = pnand %p369_p4, %p476_p5 }
 0x273   : > { %p375_p11 = por %p374_p10, %p373_p9 }
 0x274   : > { %p371_p8 = pneg %p370_p7 }
 0x276   : > { %p376_p12 = pnand %p375_p11, %p371_p8 }
 0x278   : > { %379 = shalt.err (!%p376_p12)
}
 0x279   : > { %310 = dma.vmem_to_hbm [thread:$0]  (%p476_p5), %s242_s10, 64, %s239_s19, %s228_s20  }
 0x27a PF: > { %p316_p13 = scmp.ge.s32.totalorder %s414_s15, 2  ;;  %s253_s6 = sand.u32 1, %s402_s12  }
 0x27b   : > { %s254_s7 = scalar_lea.sflag [#allocation3], %s253_s6 }
 0x27c   : > { %p313_p0 = pnand %p316_p13, %p480_p6 }
 0x27e   : > { %p314_p1 = pneg %p313_p0 }
 0x280   : > { %397 = dma.done.wait (%p314_p1), %s254_s7, 64  }
 0x281   : > { %399 = vsyncadd (%p314_p1), %s254_s7, 4294967232  ;;  %p13_p2 = scmp.ge.s32.totalorder %s463_s18, 4   ;;  %s537_s12 = smov %s406_s13 }
 0x282   : > { %s538_s13 = smov %s410_s14  ;;  %s539_s14 = smov %s474_s21 }
 0x283   : > { %s540_s15 = smov %s463_s18  ;;  %15 = sbr.rel (!%p13_p2) target bundleno = 3 (0x3), region = 67 }
 0x288   :  { %259 = vsyncpa [#allocation3], 1 }
 0x289   :  { %261 = vsyncpa [#allocation3 + $0x1], 1 }

</bundles_post_ra>
